<compile_context>
chip_gen: v6e
topology: v6e:2x2x1
jax: 0.10.0
libtpu: 0.0.40
codegen_flags: <defaults>
</compile_context>

<pallas_src>
import functools
import math

import jax
import jax.numpy as jnp
from jax import lax
from jax.experimental import pallas as pl
from jax.experimental.pallas import tpu as pltpu


def _round_up(x, m):
    return ((x + m - 1) // m) * m


def _protonet_kernel(shot, ways, nk, nk_pad, nq_pad, p_pad,
                     x_ref, w_ref, out_ref):
    """One episode per grid step.

    x_ref:   (n_pad, K) f32 flattened inputs, support rows in [0, nk), zero padding
             in [nk, nk_pad), query rows in [nk_pad, nk_pad + nq_pad).
    w_ref:   (K, D) bf16 synthetic feature-extractor weight (VMEM-resident across grid).
    out_ref: (nq_pad, p_pad) f32 lane-dense logits block.
    """
    # Feature extraction for the whole episode: cast activations to bf16 on the VPU
    # right before the MXU matmul; f32 accumulation.
    x_bf = x_ref[...].astype(jnp.bfloat16)                          # (n_pad, K)
    feats = jnp.dot(x_bf, w_ref[...],
                    preferred_element_type=jnp.float32)             # (n_pad, D) f32

    # Prototype shot-mean via one small MXU matmul. The mixing matrix is built from
    # iotas in-kernel (constant-folded, no HBM input). The 2/shot scale folds the
    # "2 * q.p" factor of the distance expansion into the prototype operand for free.
    row = lax.broadcasted_iota(jnp.int32, (p_pad, nk_pad), 0)
    col = lax.broadcasted_iota(jnp.int32, (p_pad, nk_pad), 1)
    mix2 = jnp.where((row < ways) & (col < nk) & ((col % ways) == row),
                     2.0 / shot, 0.0).astype(jnp.float32)           # (p_pad, nk_pad)
    proto2 = jnp.dot(mix2, feats[:nk_pad, :],
                     preferred_element_type=jnp.float32)            # (p_pad, D) == 2 * proto

    query = feats[nk_pad:nk_pad + nq_pad, :]                        # (nq_pad, D), free slice

    # -||q - p||^2 = 2 q.p - ||q||^2 - ||p||^2  (both contractions on the MXU).
    qp2 = lax.dot_general(query, proto2, (((1,), (1,)), ((), ())),
                          preferred_element_type=jnp.float32)       # (nq_pad, p_pad) = 2 q.p
    q_norm = jnp.sum(query * query, axis=-1, keepdims=True)         # (nq_pad, 1)
    p_sq = proto2 * proto2                                          # = 4 * p*p
    quarter = jnp.full((1, p_sq.shape[-1]), 0.25, jnp.float32)
    p_norm = lax.dot_general(quarter, p_sq, (((1,), (1,)), ((), ())),
                             preferred_element_type=jnp.float32)    # (1, p_pad) = ||p||^2

    out_ref[...] = qp2 - q_norm - p_norm                            # lane-dense store


@functools.partial(jax.jit, static_argnames=("shot", "ways"))
def no_adapter_forward_batched(data, weight, *, shot, ways):
    """data: (E, nk + nq, C, H, W) f32; weight: (C*H*W, D), ideally already bf16.
    Returns (E, nq, ways) logits."""
    E, n_total = data.shape[0], data.shape[1]
    nk = shot * ways
    nq = n_total - nk

    nk_pad = _round_up(nk, 8)                  # query rows start on a sublane boundary
    nq_pad = _round_up(max(nq, 1), 8)          # (8, .)-aligned output block
    n_pad = nk_pad + nq_pad
    p_pad = _round_up(max(ways, 128), 128)     # lane-dense prototype padding

    flat = data.reshape(E, n_total, -1)        # (E, N, K), stays f32 (cast happens in-kernel)
    K = flat.shape[-1]
    if nk_pad == nk and nq_pad == nq:
        x = flat
    else:
        x = jnp.zeros((E, n_pad, K), flat.dtype)
        x = x.at[:, :nk].set(flat[:, :nk])
        x = x.at[:, nk_pad:nk_pad + nq].set(flat[:, nk:])

    # Weight is expected to be persisted in bf16 outside the per-call path; the cast
    # below is a static-dtype no-op when that is the case.
    w = weight if weight.dtype == jnp.bfloat16 else weight.astype(jnp.bfloat16)
    D = w.shape[-1]

    kernel = functools.partial(_protonet_kernel, shot, ways, nk, nk_pad, nq_pad, p_pad)
    logits_wide = pl.pallas_call(
        kernel,
        out_shape=jax.ShapeDtypeStruct((E, nq_pad, p_pad), jnp.float32),
        grid=(E,),
        in_specs=[
            # Per-episode activation block (leading episode dim squeezed away).
            pl.BlockSpec((None, n_pad, K), lambda e: (e, 0, 0)),
            # Weight: same block index every grid step -> DMA'd once, VMEM-resident.
            pl.BlockSpec((K, D), lambda e: (0, 0)),
        ],
        out_specs=pl.BlockSpec((None, nq_pad, p_pad), lambda e: (e, 0, 0)),
        compiler_params=pltpu.CompilerParams(
            dimension_semantics=("parallel",)),   # shard episodes across cores on v7x
    )(x, w)
    return logits_wide[:, :nq, :ways]


def no_adapter_forward(data, weight, *, shot, ways):
    """Single-episode forward matching the PyTorch module. data: (nk+nq, C, H, W)."""
    return no_adapter_forward_batched(data[None], weight, shot=shot, ways=ways)[0]


def _reference(data, weight, *, shot, ways):
    nk = shot * ways
    flat = data.reshape(data.shape[0], -1).astype(jnp.float32)
    sup = flat[:nk] @ weight
    qry = flat[nk:] @ weight
    proto = sup.reshape(shot, ways, -1).mean(0)
    diff = qry[:, None, :] - proto[None, :, :]
    return -jnp.sum(diff * diff, axis=-1)


if __name__ == "__main__":
    shot, ways = 2, 4          # args.shot, args.train_way (training path)
    nk = shot * ways
    nq = 8                     # number of query samples
    C, H, W = 4, 16, 16
    D = 128                    # synthetic feature dimension (lane-aligned)

    key = jax.random.PRNGKey(0)
    kd, kw, kb = jax.random.split(key, 3)
    data = jax.random.normal(kd, (nk + nq, C, H, W), jnp.float32)
    feat_in = C * H * W
    weight = jax.random.normal(kw, (feat_in, D), jnp.float32) * (1.0 / math.sqrt(feat_in))
    # Persist the extractor weight in bf16 ONCE (outside the per-call path).
    weight_bf16 = weight.astype(jnp.bfloat16)

    # Single-episode forward (module semantics).
    logits = no_adapter_forward(data, weight_bf16, shot=shot, ways=ways)
    logits = jax.block_until_ready(logits)
    assert logits.shape == (nq, ways), logits.shape
    ref = _reference(data, weight, shot=shot, ways=ways)
    assert jnp.allclose(logits, ref, rtol=2e-2, atol=5e-2), (logits, ref)

    # Episode-batched path: weight stays VMEM-resident across the episode grid.
    E = 3
    data_batch = jax.random.normal(kb, (E, nk + nq, C, H, W), jnp.float32)
    logits_b = no_adapter_forward_batched(data_batch, weight_bf16, shot=shot, ways=ways)
    logits_b = jax.block_until_ready(logits_b)
    assert logits_b.shape == (E, nq, ways), logits_b.shape
    for e in range(E):
        ref_e = _reference(data_batch[e], weight, shot=shot, ways=ways)
        assert jnp.allclose(logits_b[e], ref_e, rtol=2e-2, atol=5e-2), e

    print("KERNEL_OK")
</pallas_src>

<mosaic_0001>
module attributes {stable_mosaic.version = 11 : i64} {
  func.func @_protonet_kernel(%arg0: i32, %arg1: memref<1x16x1024xf32, #tpu.memory_space<vmem>>, %arg2: memref<1024x128xbf16, #tpu.memory_space<vmem>>, %arg3: memref<1x8x128xf32, #tpu.memory_space<vmem>>) attributes {dimension_semantics = [#tpu.dimension_semantics<parallel>], iteration_bounds = array<i64: 1>, scalar_prefetch = 0 : i64, scratch_operands = 0 : i64, tpu.core_type = #tpu.core_type<tc>, window_params = [{transform_indices = @transform_0, window_bounds = array<i64: 1, 16, 1024>}, {pipeline_mode = #tpu.pipeline_mode<synchronous>, transform_indices = @transform_1, window_bounds = array<i64: 1024, 128>}, {transform_indices = @transform_2, window_bounds = array<i64: 1, 8, 128>}]} {
    %c0 = arith.constant 0 : index
    %c0_0 = arith.constant 0 : index
    %c0_1 = arith.constant 0 : index
    %0 = vector.load %arg1[%c0, %c0_0, %c0_1] : memref<1x16x1024xf32, #tpu.memory_space<vmem>>, vector<1x16x1024xf32>
    %1 = vector.shape_cast %0 : vector<1x16x1024xf32> to vector<16x1024xf32>
    %2 = arith.truncf %1 : vector<16x1024xf32> to vector<16x1024xbf16>
    %c0_2 = arith.constant 0 : index
    %c0_3 = arith.constant 0 : index
    %3 = vector.load %arg2[%c0_2, %c0_3] : memref<1024x128xbf16, #tpu.memory_space<vmem>>, vector<1024x128xbf16>
    %cst = arith.constant dense<0.000000e+00> : vector<16x128xf32>
    %4 = tpu.matmul %2, %3, %cst {dimension_numbers = #tpu.dot_dimension_numbers<[1], [0], [0], [1], [0, 0, 1, 1], [], []>} : vector<16x1024xbf16>, vector<1024x128xbf16>, vector<16x128xf32> -> vector<16x128xf32>
    %5 = tpu.iota {dimensions = array<i32: 0>} : vector<128x8xi32>
    %6 = tpu.iota {dimensions = array<i32: 1>} : vector<128x8xi32>
    %c4_i32 = arith.constant 4 : i32
    %7 = vector.broadcast %c4_i32 : i32 to vector<128x8xi32>
    %8 = arith.cmpi slt, %5, %7 : vector<128x8xi32>
    %c8_i32 = arith.constant 8 : i32
    %9 = vector.broadcast %c8_i32 : i32 to vector<128x8xi32>
    %10 = arith.cmpi slt, %6, %9 : vector<128x8xi32>
    %11 = arith.andi %8, %10 : vector<128x8xi1>
    %c4_i32_4 = arith.constant 4 : i32
    %c0_i32 = arith.constant 0 : i32
    %12 = arith.cmpi eq, %c4_i32_4, %c0_i32 : i32
    %c1_i32 = arith.constant 1 : i32
    %13 = arith.select %12, %c1_i32, %c4_i32_4 : i32
    %14 = vector.broadcast %13 : i32 to vector<128x8xi32>
    %15 = arith.remsi %6, %14 : vector<128x8xi32>
    %c0_i32_5 = arith.constant 0 : i32
    %16 = vector.broadcast %c0_i32_5 : i32 to vector<128x8xi32>
    %17 = arith.cmpi ne, %15, %16 : vector<128x8xi32>
    %c0_i32_6 = arith.constant 0 : i32
    %18 = vector.broadcast %c0_i32_6 : i32 to vector<128x8xi32>
    %19 = arith.cmpi slt, %15, %18 : vector<128x8xi32>
    %c0_i32_7 = arith.constant 0 : i32
    %20 = arith.cmpi slt, %13, %c0_i32_7 : i32
    %21 = vector.broadcast %20 : i1 to vector<128x8xi1>
    %22 = vector.broadcast %21 : vector<128x8xi1> to vector<128x8xi1>
    %23 = arith.xori %19, %22 : vector<128x8xi1>
    %24 = arith.andi %23, %17 : vector<128x8xi1>
    %25 = vector.broadcast %13 : i32 to vector<128x8xi32>
    %26 = arith.addi %15, %25 : vector<128x8xi32>
    %27 = arith.select %24, %26, %15 : vector<128x8xi1>, vector<128x8xi32>
    %28 = arith.cmpi eq, %27, %5 : vector<128x8xi32>
    %29 = arith.andi %11, %28 : vector<128x8xi1>
    %cst_8 = arith.constant 1.000000e+00 : f32
    %cst_9 = arith.constant 0.000000e+00 : f32
    %30 = vector.broadcast %cst_8 : f32 to vector<128x8xf32>
    %31 = vector.broadcast %cst_9 : f32 to vector<128x8xf32>
    %32 = arith.select %29, %30, %31 : vector<128x8xi1>, vector<128x8xf32>
    %33 = vector.extract_strided_slice %4 {offsets = [0, 0], sizes = [8, 128], strides = [1, 1]} : vector<16x128xf32> to vector<8x128xf32>
    %cst_10 = arith.constant dense<0.000000e+00> : vector<128x128xf32>
    %34 = tpu.matmul %32, %33, %cst_10 {dimension_numbers = #tpu.dot_dimension_numbers<[1], [0], [0], [1], [0, 0, 1, 1], [], []>} : vector<128x8xf32>, vector<8x128xf32>, vector<128x128xf32> -> vector<128x128xf32>
    %35 = vector.extract_strided_slice %4 {offsets = [8, 0], sizes = [8, 128], strides = [1, 1]} : vector<16x128xf32> to vector<8x128xf32>
    %cst_11 = arith.constant dense<0.000000e+00> : vector<8x128xf32>
    %36 = tpu.matmul %35, %34, %cst_11 {dimension_numbers = #tpu.dot_dimension_numbers<[1], [1], [0], [0], [0, 0, 1, 0], [], []>} : vector<8x128xf32>, vector<128x128xf32>, vector<8x128xf32> -> vector<8x128xf32>
    %37 = arith.mulf %35, %35 : vector<8x128xf32>
    %cst_12 = arith.constant dense<0.000000e+00> : vector<8xf32>
    %38 = vector.multi_reduction <add>, %37, %cst_12 [1] : vector<8x128xf32> to vector<8xf32>
    %39 = vector.shape_cast %38 : vector<8xf32> to vector<8x1xf32>
    %40 = arith.mulf %34, %34 : vector<128x128xf32>
    %cst_13 = arith.constant 2.500000e-01 : f32
    %41 = vector.broadcast %cst_13 : f32 to vector<1x128xf32>
    %cst_14 = arith.constant dense<0.000000e+00> : vector<1x128xf32>
    %42 = tpu.matmul %41, %40, %cst_14 {dimension_numbers = #tpu.dot_dimension_numbers<[1], [1], [0], [0], [0, 0, 1, 0], [], []>} : vector<1x128xf32>, vector<128x128xf32>, vector<1x128xf32> -> vector<1x128xf32>
    %43 = vector.broadcast %39 : vector<8x1xf32> to vector<8x128xf32>
    %44 = arith.subf %36, %43 : vector<8x128xf32>
    %45 = vector.broadcast %42 : vector<1x128xf32> to vector<8x128xf32>
    %46 = arith.subf %44, %45 : vector<8x128xf32>
    %c0_15 = arith.constant 0 : index
    %c0_16 = arith.constant 0 : index
    %c0_17 = arith.constant 0 : index
    %47 = vector.load %arg3[%c0_15, %c0_16, %c0_17] : memref<1x8x128xf32, #tpu.memory_space<vmem>>, vector<1x8x128xf32>
    %48 = vector.shape_cast %47 : vector<1x8x128xf32> to vector<8x128xf32>
    %49 = vector.shape_cast %46 : vector<8x128xf32> to vector<1x8x128xf32>
    tpu.vector_store %arg3[%c0_15, %c0_16, %c0_17], %49 {strides = array<i32>} : memref<1x8x128xf32, #tpu.memory_space<vmem>>, vector<1x8x128xf32>,
    return
  }
  func.func @transform_0(%arg0: i32) -> (i32, i32, i32) {
    %c0_i32 = arith.constant 0 : i32
    %c0_i32_0 = arith.constant 0 : i32
    %c0_i32_1 = arith.constant 0 : i32
    return %arg0, %c0_i32, %c0_i32_0 : i32, i32, i32
  }
  func.func @transform_1(%arg0: i32) -> (i32, i32) {
    %c0_i32 = arith.constant 0 : i32
    %c0_i32_0 = arith.constant 0 : i32
    %c0_i32_1 = arith.constant 0 : i32
    return %c0_i32, %c0_i32_0 : i32, i32
  }
  func.func @transform_2(%arg0: i32) -> (i32, i32, i32) {
    %c0_i32 = arith.constant 0 : i32
    %c0_i32_0 = arith.constant 0 : i32
    %c0_i32_1 = arith.constant 0 : i32
    return %arg0, %c0_i32, %c0_i32_0 : i32, i32, i32
  }
}

</mosaic_0001>

<bundles_post_ra>
// kernel: no_adapter_forward_batched.1
= control target key start
LH: loop header
LB: loop body
LE: loop exit
PB: predicated region body
PF: predicated region fallthrough
CT: control target
= control target key end

     0   :  { %vm824_vm5 = vcmask 64512   ;;  %vm1556_vm6 = vmmov 0   ;;  %s1901_s1 = inlined_call_operand.vmem [shape: bf16[1024,128], index: 1, kind: input, shape index: {}]   ;;  %s1902_s0 = inlined_call_operand.vmem [shape: f32[1,16,1024], index: 0, kind: input, shape index: {}]   ;;  %s1903_s2 = inlined_call_operand.vmem [shape: f32[1,8,128], index: 2, kind: output, shape index: {}]  }
   0x1   :  { %v1491_v0 = vld [vmem:[%s1901_s1 + $0x78] sm:$0xff]   ;;  %v1495_v4 = vld [vmem:[%s1901_s1 + $0x70] sm:$0xff]   ;;  %v1499_v8 = vld [vmem:[%s1901_s1 + $0x68] sm:$0xff]  }
   0x2   :  { %v1492_v1 = vld [vmem:[%s1901_s1 + $0xf8] sm:$0xff]   ;;  %1253 = vmatprep.subr.bf16.mxu0 %v1491_v0  ;;  %v1496_v5 = vld [vmem:[%s1901_s1 + $0xf0] sm:$0xff]   ;;  %v1500_v9 = vld [vmem:[%s1901_s1 + $0xe8] sm:$0xff]  }
   0x3   :  { %v1493_v2 = vld [vmem:[%s1901_s1 + $0x38] sm:$0xff]   ;;  %1275 = vmatprep.subr.bf16.mxu1 %v1492_v1  ;;  %v1497_v6 = vld [vmem:[%s1901_s1 + $0x30] sm:$0xff]   ;;  %v1501_v10 = vld [vmem:[%s1901_s1 + $0x28] sm:$0xff]  }
   0x4   :  { %v1494_v3 = vld [vmem:[%s1901_s1 + $0xb8] sm:$0xff]   ;;  %1254 = vmatpush3.bf16.msra.mxu0 %v1493_v2  ;;  %v1498_v7 = vld [vmem:[%s1901_s1 + $0xb0] sm:$0xff]   ;;  %v1502_v11 = vld [vmem:[%s1901_s1 + $0xa8] sm:$0xff]  }
   0x5   :  { %1276 = vmatpush3.bf16.msra.mxu1 %v1494_v3  ;;  %1255 = vmatprep.subr.bf16.mxu0 %v1495_v4  ;;  %v1503_v12 = vld [vmem:[%s1901_s1 + $0x60] sm:$0xff]   ;;  %v1507_v16 = vld [vmem:[%s1901_s1 + $0x58] sm:$0xff]   ;;  %v1511_v20 = vld [vmem:[%s1901_s1 + $0x50] sm:$0xff]  }
   0x6   :  { %1277 = vmatprep.subr.bf16.mxu1 %v1496_v5  ;;  %v1504_v13 = vld [vmem:[%s1901_s1 + $0xe0] sm:$0xff]   ;;  %v1508_v17 = vld [vmem:[%s1901_s1 + $0xd8] sm:$0xff]   ;;  %v1512_v21 = vld [vmem:[%s1901_s1 + $0xd0] sm:$0xff]  }
   0x7   :  { %v1505_v14 = vld [vmem:[%s1901_s1 + $0x20] sm:$0xff]   ;;  %v1509_v18 = vld [vmem:[%s1901_s1 + $0x18] sm:$0xff]   ;;  %v1513_v22 = vld [vmem:[%s1901_s1 + $0x10] sm:$0xff]  }
   0x8   :  { %1256 = vmatpush3.bf16.msra.mxu0 %v1497_v6  ;;  %v1506_v15 = vld [vmem:[%s1901_s1 + $0xa0] sm:$0xff]   ;;  %v1510_v19 = vld [vmem:[%s1901_s1 + $0x98] sm:$0xff]   ;;  %v1514_v23 = vld [vmem:[%s1901_s1 + $0x90] sm:$0xff]  }
   0x9   :  { %1278 = vmatpush3.bf16.msra.mxu1 %v1498_v7  ;;  %1257 = vmatprep.subr.bf16.mxu0 %v1499_v8  ;;  %v1515_v24 = vld [vmem:[%s1901_s1 + $0x48] sm:$0xff]   ;;  %v1519_v28 = vld [vmem:[%s1901_s1 + $0x40] sm:$0xff]   ;;  %v15_v34 = vld [vmem:[%s1902_s0 + $0x18] sm:$0xff] }
   0xa   :  { %1279 = vmatprep.subr.bf16.mxu1 %v1500_v9  ;;  %v1516_v25 = vld [vmem:[%s1901_s1 + $0xc8] sm:$0xff]   ;;  %v1520_v29 = vld [vmem:[%s1901_s1 + $0xc0] sm:$0xff]   ;;  %v23_v36 = vld [vmem:[%s1902_s0 + $0x58] sm:$0xff] }
   0xb   :  { %v1517_v26 = vld [vmem:[%s1901_s1 + $0x8] sm:$0xff]   ;;  %v1521_v30 = vld [vmem:[%s1901_s1] sm:$0xff]   ;;  %v31_v39 = vpack.c.bf16 %v23_v36, %v15_v34  ;;  %v14_v41 = vld [vmem:[%s1902_s0 + $0x10] sm:$0xff] }
   0xc   :  { %1258 = vmatpush3.bf16.msra.mxu0 %v1501_v10  ;;  %v1518_v27 = vld [vmem:[%s1901_s1 + $0x88] sm:$0xff]   ;;  %v1522_v31 = vld [vmem:[%s1901_s1 + $0x80] sm:$0xff]   ;;  %v22_v42 = vld [vmem:[%s1902_s0 + $0x50] sm:$0xff] }
   0xd   :  { %1280 = vmatpush3.bf16.msra.mxu1 %v1502_v11  ;;  %1259 = vmatprep.subr.bf16.mxu0 %v1503_v12  ;;  %v13_v32 = vld [vmem:[%s1902_s0 + $0x8] sm:$0xff]  ;;  %v12_v37 = vld [vmem:[%s1902_s0] sm:$0xff]  ;;  %v30_v43 = vpack.c.bf16 %v22_v42, %v14_v41  ;;  %v1523_v44 = vld [vmem:[%s1901_s1 + $0x178] sm:$0xff]  }
   0xe   :  { %1281 = vmatprep.subr.bf16.mxu1 %v1504_v13  ;;  %v21_v33 = vld [vmem:[%s1902_s0 + $0x48] sm:$0xff]  ;;  %v20_v38 = vld [vmem:[%s1902_s0 + $0x40] sm:$0xff]  ;;  %621 = vmatprep.mubr.bf16.mxu1 %v31_v39  ;;  %v1524_v45 = vld [vmem:[%s1901_s1 + $0x1f8] sm:$0xff]  }
   0xf   :  { %v29_v35 = vpack.c.bf16 %v21_v33, %v13_v32  ;;  %v28_v40 = vpack.c.bf16 %v20_v38, %v12_v37  ;;  %v1525_v46 = vld [vmem:[%s1901_s1 + $0x138] sm:$0xff]   ;;  %v1527_v48 = vld [vmem:[%s1901_s1 + $0x170] sm:$0xff]   ;;  %v1531_v52 = vld [vmem:[%s1901_s1 + $0x168] sm:$0xff]  }
  0x10   :  { %1260 = vmatpush3.bf16.msra.mxu0 %v1505_v14  ;;  %v1526_v47 = vld [vmem:[%s1901_s1 + $0x1b8] sm:$0xff]   ;;  %v1528_v49 = vld [vmem:[%s1901_s1 + $0x1f0] sm:$0xff]   ;;  %v1532_v53 = vld [vmem:[%s1901_s1 + $0x1e8] sm:$0xff]  }
  0x11   :  { %1282 = vmatpush3.bf16.msra.mxu1 %v1506_v15  ;;  %1261 = vmatprep.subr.bf16.mxu0 %v1507_v16  ;;  %v1529_v50 = vld [vmem:[%s1901_s1 + $0x130] sm:$0xff]   ;;  %v1533_v54 = vld [vmem:[%s1901_s1 + $0x128] sm:$0xff]   ;;  %v1535_v56 = vld [vmem:[%s1901_s1 + $0x160] sm:$0xff]  }
  0x12   :  { %1283 = vmatprep.subr.bf16.mxu1 %v1508_v17  ;;  %580 = vmatprep.mubr.bf16.mxu0 %v29_v35  ;;  %v1530_v51 = vld [vmem:[%s1901_s1 + $0x1b0] sm:$0xff]   ;;  %v1534_v55 = vld [vmem:[%s1901_s1 + $0x1a8] sm:$0xff]   ;;  %v1536_v57 = vld [vmem:[%s1901_s1 + $0x1e0] sm:$0xff]  }
  0x13   :  { %v1537_v58 = vld [vmem:[%s1901_s1 + $0x120] sm:$0xff]   ;;  %v1539_v60 = vld [vmem:[%s1901_s1 + $0x158] sm:$0xff]   ;;  %v1543_v0 = vld [vmem:[%s1901_s1 + $0x150] sm:$0xff]  }
  0x14   :  { %1262 = vmatpush3.bf16.msra.mxu0 %v1509_v18  ;;  %v1538_v59 = vld [vmem:[%s1901_s1 + $0x1a0] sm:$0xff]   ;;  %v1540_v61 = vld [vmem:[%s1901_s1 + $0x1d8] sm:$0xff]   ;;  %v1544_v1 = vld [vmem:[%s1901_s1 + $0x1d0] sm:$0xff]  }
  0x15   :  { %1284 = vmatpush3.bf16.msra.mxu1 %v1510_v19  ;;  %1263 = vmatprep.subr.bf16.mxu0 %v1511_v20  ;;  %v1541_v62 = vld [vmem:[%s1901_s1 + $0x118] sm:$0xff]   ;;  %v1545_v2 = vld [vmem:[%s1901_s1 + $0x110] sm:$0xff]   ;;  %v1547_v4 = vld [vmem:[%s1901_s1 + $0x148] sm:$0xff]  }
  0x16   :  { %1285 = vmatprep.subr.bf16.mxu1 %v1512_v21  ;;  %v1542_v63 = vld [vmem:[%s1901_s1 + $0x198] sm:$0xff]   ;;  %v1546_v3 = vld [vmem:[%s1901_s1 + $0x190] sm:$0xff]   ;;  %v1548_v5 = vld [vmem:[%s1901_s1 + $0x1c8] sm:$0xff]  }
  0x17   :  { %v1549_v6 = vld [vmem:[%s1901_s1 + $0x108] sm:$0xff]   ;;  %v1551_v8 = vld [vmem:[%s1901_s1 + $0x140] sm:$0xff]   ;;  %v19_v14 = vld [vmem:[%s1902_s0 + $0x38] sm:$0xff] }
  0x18   :  { %1264 = vmatpush3.bf16.msra.mxu0 %v1513_v22  ;;  %v1550_v7 = vld [vmem:[%s1901_s1 + $0x188] sm:$0xff]   ;;  %v1552_v9 = vld [vmem:[%s1901_s1 + $0x1c0] sm:$0xff]   ;;  %v27_v15 = vld [vmem:[%s1902_s0 + $0x78] sm:$0xff] }
  0x19   :  { %1286 = vmatpush3.bf16.msra.mxu1 %v1514_v23  ;;  %1265 = vmatprep.subr.bf16.mxu0 %v1515_v24  ;;  %v1553_v10 = vld [vmem:[%s1901_s1 + $0x100] sm:$0xff]   ;;  %v17_v12 = vld [vmem:[%s1902_s0 + $0x28] sm:$0xff]  ;;  %v35_v17 = vpack.c.bf16 %v27_v15, %v19_v14  ;;  %v18_v20 = vld [vmem:[%s1902_s0 + $0x30] sm:$0xff]  ;;  %v712_v24 = vlaneseq }
  0x1a   :  { %1287 = vmatprep.subr.bf16.mxu1 %v1516_v25  ;;  %v1554_v11 = vld [vmem:[%s1901_s1 + $0x180] sm:$0xff]   ;;  %v25_v13 = vld [vmem:[%s1902_s0 + $0x68] sm:$0xff]  ;;  %v26_v22 = vld [vmem:[%s1902_s0 + $0x70] sm:$0xff] }
  0x1b   :  { %v33_v16 = vpack.c.bf16 %v25_v13, %v17_v12  ;;  %v16_v18 = vld [vmem:[%s1902_s0 + $0x20] sm:$0xff]  ;;  %v34_v23 = vpack.c.bf16 %v26_v22, %v18_v20  ;;  %v730_v25 = vand.u32 127, %v712_v24 }
  0x1c   :  { %1266 = vmatpush3.bf16.msra.mxu0 %v1517_v26  ;;  %v24_v19 = vld [vmem:[%s1902_s0 + $0x60] sm:$0xff]  ;;  %v1813_v26 = vshrl.u32 %v712_v24, 7 }
  0x1d   :  { %1288 = vmatpush3.bf16.msra.mxu1 %v1518_v27  ;;  %1267 = vmatprep.subr.bf16.mxu0 %v1519_v28  ;;  %v32_v21 = vpack.c.bf16 %v24_v19, %v16_v18  ;;  %v768_v27 = vand.u32 3, %v730_v25  ;;  %vm747_vm1 = vcmp.lt.s32.totalorder %v730_v25, 8  ;;  %v1555_v28 = vmov 0.0  }
  0x1e   :  { %1289 = vmatprep.subr.bf16.mxu1 %v1520_v29  ;;  %vm731_vm0 = vcmp.lt.s32.totalorder %v1813_v26, 4 }
  0x1f   :  { %vm748_vm2 = vmand %vm731_vm0, %vm747_vm1  ;;  %vm776_vm3 = vcmp.eq.s32.totalorder %v768_v27, %v1813_v26 }
  0x20   :  { %1268 = vmatpush3.bf16.msra.mxu0 %v1521_v30  ;;  %vm792_vm4 = vmand %vm748_vm2, %vm776_vm3 }
  0x21   :  { %1290 = vmatpush3.bf16.msra.mxu1 %v1522_v31  ;;  %1297 = vmatprep.subr.bf16.mxu0 %v1523_v44  ;;  %v808_v29 = vsel %vm792_vm4, 1.0, %v1555_v28 }
  0x22   :  { %1319 = vmatprep.subr.bf16.mxu1 %v1524_v45 }
  0x23   :  { %581 = vmatmul.mubr.bf16.vlgmr.msra.gmra.mxu0 %v28_v40 }
  0x24   :  { %622 = vmatmul.mubr.bf16.vlgmr.msra.gmra.mxu1 %v30_v43  ;;  %1298 = vmatpush3.bf16.msra.mxu0 %v1525_v46 }
  0x25   :  { %1320 = vmatpush3.bf16.msra.mxu1 %v1526_v47  ;;  %1299 = vmatprep.subr.bf16.mxu0 %v1527_v48 }
  0x26   :  { %1321 = vmatprep.subr.bf16.mxu1 %v1528_v49  ;;  %662 = vmatprep.mubr.bf16.mxu0 %v33_v16 }
  0x27   :  { %703 = vmatprep.mubr.bf16.mxu1 %v35_v17 }
  0x28   :  { %1300 = vmatpush3.bf16.msra.mxu0 %v1529_v50 }
  0x29   :  { %1322 = vmatpush3.bf16.msra.mxu1 %v1530_v51  ;;  %1301 = vmatprep.subr.bf16.mxu0 %v1531_v52 }
  0x2a   :  { %1323 = vmatprep.subr.bf16.mxu1 %v1532_v53 }
  0x2c   :  { %1302 = vmatpush3.bf16.msra.mxu0 %v1533_v54 }
  0x2d   :  { %1324 = vmatpush3.bf16.msra.mxu1 %v1534_v55  ;;  %1303 = vmatprep.subr.bf16.mxu0 %v1535_v56 }
  0x2e   :  { %1325 = vmatprep.subr.bf16.mxu1 %v1536_v57 }
  0x30   :  { %1304 = vmatpush3.bf16.msra.mxu0 %v1537_v58 }
  0x31   :  { %1326 = vmatpush3.bf16.msra.mxu1 %v1538_v59  ;;  %1305 = vmatprep.subr.bf16.mxu0 %v1539_v60 }
  0x32   :  { %1327 = vmatprep.subr.bf16.mxu1 %v1540_v61 }
  0x34   :  { %1306 = vmatpush3.bf16.msra.mxu0 %v1541_v62 }
  0x35   :  { %1328 = vmatpush3.bf16.msra.mxu1 %v1542_v63  ;;  %1307 = vmatprep.subr.bf16.mxu0 %v1543_v0 }
  0x36   :  { %1329 = vmatprep.subr.bf16.mxu1 %v1544_v1 }
  0x38   :  { %1308 = vmatpush3.bf16.msra.mxu0 %v1545_v2 }
  0x39   :  { %1330 = vmatpush3.bf16.msra.mxu1 %v1546_v3  ;;  %1309 = vmatprep.subr.bf16.mxu0 %v1547_v4 }
  0x3a   :  { %1331 = vmatprep.subr.bf16.mxu1 %v1548_v5 }
  0x3c   :  { %1310 = vmatpush3.bf16.msra.mxu0 %v1549_v6 }
  0x3d   :  { %1332 = vmatpush3.bf16.msra.mxu1 %v1550_v7  ;;  %1311 = vmatprep.subr.bf16.mxu0 %v1551_v8 }
  0x3e   :  { %1333 = vmatprep.subr.bf16.mxu1 %v1552_v9 }
  0x40   :  { %1312 = vmatpush3.bf16.msra.mxu0 %v1553_v10 }
  0x41   :  { %1334 = vmatpush3.bf16.msra.mxu1 %v1554_v11 }
  0x42   :  { %1418 = vmatprep.subr.mxu1 %v1555_v28 }
  0x43   :  { %663 = vmatmul.mubr.bf16.vlgmr.msra.gmra.mxu0 %v32_v21 }
  0x44   :  { %704 = vmatmul.mubr.bf16.vlgmr.msra.gmra.mxu1 %v34_v23  ;;  %1394 = vmatprep.mubr.msk.f32.mxu0 %vm824_vm5, %v808_v29 }
  0x45   :  { %1450 = vmatprep.mubr.msk.f32.mxu1 %vm1556_vm6, %v1555_v28 }
  0xe3   :  { %v1269_v30 = vpop.f32.mrf.mxu0 }
  0xe4   :  { %v1291_v31 = vpop.f32.mrf.mxu1 }
  0xe5   :  { %v1270_v32 = vpop.f32.mrf.mxu0 }
  0xe6   :  { %v1292_v33 = vpop.f32.mrf.mxu1  ;;  %v1271_v37 = vadd.f32 %v1270_v32, %v1269_v30  ;;  %v1180_v32 = vsub.s32 0, %v1813_v26 }
  0xe7   :  { %v1272_v34 = vpop.f32.mrf.mxu0  ;;  %v1293_v38 = vadd.f32 %v1292_v33, %v1291_v31  ;;  %v1557_v31 = vmov 0.25  }
  0xe8   :  { %v1294_v35 = vpop.f32.mrf.mxu1 }
  0xe9   :  { %v1273_v36 = vpop.f32.mrf.mxu0  ;;  %v624_v43 = vadd.f32 %v1293_v38, %v1271_v37 }
  0xea   :  { %v1295_v39 = vpop.f32.mrf.mxu1  ;;  %v1274_v44 = vadd.f32 %v1273_v36, %v1272_v34 }
  0xeb   :  { %v1296_v45 = vadd.f32 %v1295_v39, %v1294_v35 }
  0xed   :  { %v627_v53 = vadd.f32 %v1296_v45, %v1274_v44 }
 0x103   :  { %v1313_v40 = vpop.f32.mrf.mxu0 }
 0x104   :  { %v1335_v41 = vpop.f32.mrf.mxu1 }
 0x105   :  { %v1314_v42 = vpop.f32.mrf.mxu0 }
 0x106   :  { %v1315_v46 = vadd.f32 %v1314_v42, %v1313_v40  ;;  %v1336_v47 = vpop.f32.mrf.mxu1 }
 0x107   :  { %v1316_v48 = vpop.f32.mrf.mxu0  ;;  %v1337_v50 = vadd.f32 %v1336_v47, %v1335_v41 }
 0x108   :  { %v665_v49 = vadd.f32 %v1315_v46, %v624_v43  ;;  %v1338_v51 = vpop.f32.mrf.mxu1 }
 0x109   :  { %v1317_v52 = vpop.f32.mrf.mxu0 }
 0x10a   :  { %v706_v54 = vadd.f32 %v1337_v50, %v665_v49  ;;  %v1318_v55 = vadd.f32 %v1317_v52, %v1316_v48  ;;  %v1339_v56 = vpop.f32.mrf.mxu1 }
 0x10b   :  { %v1340_v58 = vadd.f32 %v1339_v56, %v1338_v51 }
 0x10c   :  { %v668_v57 = vadd.f32 %v1318_v55, %v627_v53  ;;  %1392 = vmatprep.subr.mxu0 %v706_v54 }
 0x10d   :  { %1393 = vmatpush3.msra.mxu0 %v706_v54 }
 0x10e   :  { %1395 = vmatmul.mubr.f32.vlgmr.msra.gmra.mxu0 %v1555_v28  ;;  %v1820_v59 = vadd.f32 %v1340_v58, %v668_v57  ;;  %1453 = vmatprep.subr.mxu0 %v1555_v28 }
 0x10f   :  { %1397 = vmatprep.mubr.f32.mxu0 %v1555_v28 }
 0x110   :  { %v1088_v60 = vmul.f32 %v1820_v59, %v1820_v59 }
 0x112   :  { %1398 = vmatmul.mubr.f32.gmra.mxu0 %v1555_v28  ;;  %1089 = vadd.xlane.f32.xlu0 %v1088_v60 }
 0x113   :  { %1400 = vmatprep.mubr.f32.mxu0 %v1555_v28 }
 0x116   :  { %1401 = vmatmul.mubr.f32.gmra.mxu0 %v1555_v28 }
 0x117   :  { %1403 = vmatprep.mubr.f32.mxu0 %v1555_v28 }
 0x11a   :  { %1404 = vmatmul.mubr.f32.gmra.mxu0 %v1555_v28 }
 0x11b   :  { %1406 = vmatprep.mubr.f32.mxu0 %v1555_v28 }
 0x11e   :  { %1407 = vmatmul.mubr.f32.gmra.mxu0 %v1555_v28 }
 0x11f   :  { %1409 = vmatprep.mubr.f32.mxu0 %v1555_v28 }
 0x122   :  { %1410 = vmatmul.mubr.f32.gmra.mxu0 %v1555_v28 }
 0x123   :  { %1412 = vmatprep.mubr.f32.mxu0 %v1555_v28 }
 0x126   :  { %1413 = vmatmul.mubr.f32.gmra.mxu0 %v1555_v28 }
 0x127   :  { %1415 = vmatprep.mubr.f32.mxu0 %v1555_v28 }
 0x12a   :  { %1416 = vmatmul.mubr.f32.gmra.mxu0 %v1555_v28 }
 0x12b   :  { %1485 = vmatprep.mubr.msk.f32.mxu0 %vm1556_vm6, %v1555_v28 }
 0x19b   :  { %v1090_v34 = vpop.xlane.xlu0 %1089 }
 0x1ce   :  { %v1841_v61 = vpop.f32.mrf.mxu0 }
 0x1cf   :  { %v1092_v29 = vmul.f32 %v1841_v61, %v1841_v61 }
 0x1d0   :  { %v1843_v62 = vpop.f32.mrf.mxu0 }
 0x1d1   :  { %v1091_v30 = vmul.f32 %v1843_v62, %v1843_v62 }
 0x1d2   :  { %v1845_v63 = vpop.f32.mrf.mxu0 }
 0x1d3   :  { %v1094_v25 = vmul.f32 %v1845_v63, %v1845_v63 }
 0x1d4   :  { %v1847_v0 = vpop.f32.mrf.mxu0 }
 0x1d5   :  { %v1093_v27 = vmul.f32 %v1847_v0, %v1847_v0 }
 0x1d6   :  { %v1402_v1 = vpop.f32.mrf.mxu0 }
 0x1d7   :  { %v1096_v23 = vmul.f32 %v1402_v1, %v1402_v1 }
 0x1d8   :  { %v1849_v2 = vpop.f32.mrf.mxu0 }
 0x1d9   :  { %v1095_v24 = vmul.f32 %v1849_v2, %v1849_v2 }
 0x1da   :  { %v1405_v3 = vpop.f32.mrf.mxu0 }
 0x1db   :  { %v1098_v21 = vmul.f32 %v1405_v3, %v1405_v3 }
 0x1dc   :  { %v969_v4 = vpop.f32.mrf.mxu0 }
 0x1dd   :  { %v1097_v22 = vmul.f32 %v969_v4, %v969_v4 }
 0x1de   :  { %v1408_v5 = vpop.f32.mrf.mxu0 }
 0x1df   :  { %v1100_v19 = vmul.f32 %v1408_v5, %v1408_v5 }
 0x1e0   :  { %v979_v6 = vpop.f32.mrf.mxu0 }
 0x1e1   :  { %v1099_v20 = vmul.f32 %v979_v6, %v979_v6 }
 0x1e2   :  { %v1411_v7 = vpop.f32.mrf.mxu0 }
 0x1e3   :  { %v1102_v17 = vmul.f32 %v1411_v7, %v1411_v7 }
 0x1e4   :  { %v989_v8 = vpop.f32.mrf.mxu0 }
 0x1e5   :  { %v1101_v18 = vmul.f32 %v989_v8, %v989_v8 }
 0x1e6   :  { %v1414_v9 = vpop.f32.mrf.mxu0 }
 0x1e7   :  { %v1104_v15 = vmul.f32 %v1414_v9, %v1414_v9 }
 0x1e8   :  { %v999_v10 = vpop.f32.mrf.mxu0 }
 0x1e9   :  { %v1103_v16 = vmul.f32 %v999_v10, %v999_v10 }
 0x1ea   :  { %v1417_v11 = vpop.f32.mrf.mxu0 }
 0x1eb   :  { %v1106_v12 = vmul.f32 %v1417_v11, %v1417_v11  ;;  %1419 = vmatpush3.xpose.msra.mxu1 %v1417_v11 }
 0x1ec   :  { %v1009_v13 = vpop.f32.mrf.mxu0  ;;  %1420 = vmatprep.subr.mxu1 %v1555_v28 }
 0x1ed   :  { %1454 = vmatpush3.xpose.msra.mxu0 %v1106_v12  ;;  %v1105_v14 = vmul.f32 %v1009_v13, %v1009_v13 }
 0x1ee   :  { %1455 = vmatprep.subr.mxu0 %v1555_v28 }
 0x1ef   :  { %1421 = vmatpush3.xpose.msra.mxu1 %v1009_v13 }
 0x1f0   :  { %1422 = vmatprep.subr.mxu1 %v1555_v28 }
 0x1f1   :  { %1456 = vmatpush3.xpose.msra.mxu0 %v1105_v14 }
 0x1f2   :  { %1457 = vmatprep.subr.mxu0 %v1555_v28 }
 0x1f3   :  { %1423 = vmatpush3.xpose.msra.mxu1 %v1414_v9 }
 0x1f4   :  { %1424 = vmatprep.subr.mxu1 %v1555_v28 }
 0x1f5   :  { %1458 = vmatpush3.xpose.msra.mxu0 %v1104_v15 }
 0x1f6   :  { %1459 = vmatprep.subr.mxu0 %v1555_v28 }
 0x1f7   :  { %1425 = vmatpush3.xpose.msra.mxu1 %v999_v10 }
 0x1f8   :  { %1426 = vmatprep.subr.mxu1 %v1555_v28 }
 0x1f9   :  { %1460 = vmatpush3.xpose.msra.mxu0 %v1103_v16 }
 0x1fa   :  { %1461 = vmatprep.subr.mxu0 %v1555_v28 }
 0x1fb   :  { %1427 = vmatpush3.xpose.msra.mxu1 %v1411_v7 }
 0x1fc   :  { %1428 = vmatprep.subr.mxu1 %v1555_v28 }
 0x1fd   :  { %1462 = vmatpush3.xpose.msra.mxu0 %v1102_v17 }
 0x1fe   :  { %1463 = vmatprep.subr.mxu0 %v1555_v28 }
 0x1ff   :  { %1429 = vmatpush3.xpose.msra.mxu1 %v989_v8 }
 0x200   :  { %1430 = vmatprep.subr.mxu1 %v1555_v28 }
 0x201   :  { %1464 = vmatpush3.xpose.msra.mxu0 %v1101_v18 }
 0x202   :  { %1465 = vmatprep.subr.mxu0 %v1555_v28 }
 0x203   :  { %1431 = vmatpush3.xpose.msra.mxu1 %v1408_v5 }
 0x204   :  { %1432 = vmatprep.subr.mxu1 %v1555_v28 }
 0x205   :  { %1466 = vmatpush3.xpose.msra.mxu0 %v1100_v19 }
 0x206   :  { %1467 = vmatprep.subr.mxu0 %v1555_v28 }
 0x207   :  { %1433 = vmatpush3.xpose.msra.mxu1 %v979_v6 }
 0x208   :  { %1434 = vmatprep.subr.mxu1 %v1555_v28 }
 0x209   :  { %1468 = vmatpush3.xpose.msra.mxu0 %v1099_v20 }
 0x20a   :  { %1469 = vmatprep.subr.mxu0 %v1555_v28 }
 0x20b   :  { %1435 = vmatpush3.xpose.msra.mxu1 %v1405_v3 }
 0x20c   :  { %1436 = vmatprep.subr.mxu1 %v1555_v28 }
 0x20d   :  { %1470 = vmatpush3.xpose.msra.mxu0 %v1098_v21 }
 0x20e   :  { %1471 = vmatprep.subr.mxu0 %v1555_v28 }
 0x20f   :  { %1437 = vmatpush3.xpose.msra.mxu1 %v969_v4 }
 0x210   :  { %1438 = vmatprep.subr.mxu1 %v1555_v28 }
 0x211   :  { %1472 = vmatpush3.xpose.msra.mxu0 %v1097_v22 }
 0x212   :  { %1473 = vmatprep.subr.mxu0 %v1555_v28 }
 0x213   :  { %1439 = vmatpush3.xpose.msra.mxu1 %v1402_v1 }
 0x214   :  { %1440 = vmatprep.subr.mxu1 %v1555_v28 }
 0x215   :  { %1474 = vmatpush3.xpose.msra.mxu0 %v1096_v23 }
 0x216   :  { %1475 = vmatprep.subr.mxu0 %v1555_v28 }
 0x217   :  { %1441 = vmatpush3.xpose.msra.mxu1 %v1849_v2 }
 0x218   :  { %1442 = vmatprep.subr.mxu1 %v1555_v28 }
 0x219   :  { %1476 = vmatpush3.xpose.msra.mxu0 %v1095_v24 }
 0x21a   :  { %1477 = vmatprep.subr.mxu0 %v1555_v28 }
 0x21b   :  { %1443 = vmatpush3.xpose.msra.mxu1 %v1845_v63 }
 0x21c   :  { %1444 = vmatprep.subr.mxu1 %v1555_v28 }
 0x21d   :  { %1478 = vmatpush3.xpose.msra.mxu0 %v1094_v25 }
 0x21e   :  { %1479 = vmatprep.subr.mxu0 %v1555_v28 }
 0x21f   :  { %1445 = vmatpush3.xpose.msra.mxu1 %v1847_v0 }
 0x220   :  { %1446 = vmatprep.subr.mxu1 %v1555_v28 }
 0x221   :  { %1480 = vmatpush3.xpose.msra.mxu0 %v1093_v27 }
 0x222   :  { %1481 = vmatprep.subr.mxu0 %v1555_v28 }
 0x223   :  { %1447 = vmatpush3.xpose.msra.mxu1 %v1841_v61 }
 0x224   :  { %1448 = vmatprep.subr.mxu1 %v1555_v28 }
 0x225   :  { %1482 = vmatpush3.xpose.msra.mxu0 %v1092_v29 }
 0x226   :  { %1483 = vmatprep.subr.mxu0 %v1555_v28 }
 0x227   :  { %1449 = vmatpush3.xpose.msra.mxu1 %v1843_v62 }
 0x229   :  { %1484 = vmatpush3.xpose.msra.mxu0 %v1091_v30 }
 0x22a   :  { %1451 = vmatmul.mubr.f32.vlgmr.msra.gmra.mxu1 %v1820_v59 }
 0x22c   :  { %1486 = vmatmul.mubr.f32.vlgmr.msra.gmra.mxu0 %v1557_v31 }
 0x2ea   :  { %v1084_v33 = vpop.f32.mrf.mxu1 }
 0x2eb   :  { %v1177_v37 = vsub.f32 %v1084_v33, %v1090_v34 }
 0x2ec   :  { %v1452_v35 = vpop.f32.mrf.mxu1  ;;  %v1173_v36 = vpop.f32.mrf.mxu0 }
 0x2ed   :  { %v1181_v38 = vrot.slane %v1173_v36, %v1180_v32 }
 0x2ee   :  { %v1487_v39 = vpop.f32.mrf.mxu0 }
 0x2ef   :  { %v1182_v28 = vsub.f32 %v1177_v37, %v1181_v38 }
 0x2f1   :  { %1183 = vst [vmem:[%s1903_s2] sm:$0xff] %v1182_v28 }

</bundles_post_ra>
